<compile_context>
chip_gen: v7x
topology: tpu7x:2x2x1
jax: 0.10.0
libtpu: 0.0.40
codegen_flags: <defaults>
</compile_context>

<pallas_src>
import functools

import jax
import jax.numpy as jnp
from jax import lax
from jax.experimental import pallas as pl
from jax.experimental.pallas import tpu as pltpu


# -----------------------------------------------------------------------------
# Pallas kernel
# -----------------------------------------------------------------------------
def prompt_encoder_kernel(slab_ref, out_ref, *, seq_len, hidden):
    """MLP(RNN(embedding)) for the prompt encoder, fully fused, single input slab.

    slab_ref : (R, 4H) f32 packed parameters (see pack_params for the layout)
    out_ref  : (L, H)  f32 output embeddings
    """
    L = seq_len
    H = hidden
    H2 = H // 2

    slab = slab_ref[...]                                   # single VMEM load

    # ---- static carving of the packed parameter slab (prologue-only) ----
    # band 0 (rows 0:H)     : [Wih_l0 | Whh_l0 | Wih_l1 | Whh_l1]   each (H, H)
    # band 1 (rows H:2H)    : [W1 | W2 | 0 | 0]                      each (H, H)
    # band 2 (rows 2H:2H+L) : [emb | 0 | 0 | 0]                      (L, H)
    # band 3 (row  2H+L)    : [b_l0 | b_l1 | b1 | b2]                each (1, H)
    band0 = slab[0:H, :]
    wih = (band0[:, 0:H], band0[:, 2 * H:3 * H])           # fused fwd|bwd, (H, H)
    whh = (band0[:, H:2 * H], band0[:, 3 * H:4 * H])       # block-diagonal, (H, H)
    band1 = slab[H:2 * H, :]
    w1 = band1[:, 0:H]
    w2 = band1[:, H:2 * H]
    emb = slab[2 * H:2 * H + L, 0:H]
    brow = slab[2 * H + L:2 * H + L + 1, :]
    b = (brow[:, 0:H], brow[:, H:2 * H])
    b1 = brow[:, 2 * H:3 * H]
    b2 = brow[:, 3 * H:4 * H]

    # Lane mask: forward-direction lanes [0:H2), backward lanes [H2:H).
    fwd_lane = lax.broadcasted_iota(jnp.int32, (L, H), 1) < H2

    # (L, L) anti-diagonal permutation: rev_p @ x flips x along time.  One MXU op
    # replaces per-row sublane shuffles / selects.
    rid = lax.broadcasted_iota(jnp.int32, (L, L), 0)
    cid = lax.broadcasted_iota(jnp.int32, (L, L), 1)
    rev_p = (rid + cid == L - 1).astype(jnp.float32)

    def rev_time(x):                                       # flip along axis 0
        return jnp.dot(rev_p, x, preferred_element_type=jnp.float32)

    def fused_bidir_layer(x, wih_l, whh_l, b_l):
        # One fused input projection for both directions, all timesteps.
        z = jnp.dot(x, wih_l, preferred_element_type=jnp.float32) + b_l   # (L, H)
        # Backward lanes consume rows in reversed time order: one permutation matmul
        # + one whole-tile select (instead of L per-row selects inside the loop).
        z_sel = jnp.where(fwd_lane, z, rev_time(z))

        # Fully-unrolled fused recurrence: one matvec + tanh per step, 2 dirs at once.
        # TODO(synk): drive the MXU explicitly (pltpu.matmul_push_rhs once per layer +
        # matmul_acc_lhs / matmul_pop per step) so the (H,H) RHS is not re-pushed on
        # every serial step; kept as jnp.dot for portability across v5e/v6e/v7x.
        h = jnp.tanh(z_sel[0:1, :])                        # h0 == 0 -> skip h @ Whh
        hs = [h]
        for t in range(1, L):
            h = jnp.tanh(z_sel[t:t + 1, :] +
                         jnp.dot(h, whh_l, preferred_element_type=jnp.float32))
            hs.append(h)
        hstack = jnp.concatenate(hs, axis=0)               # (L, H)

        # Re-align the backward lane-half to true time order: row t takes its bwd
        # half from step L-1-t.  One permutation matmul + one whole-tile select.
        return jnp.where(fwd_lane, hstack, rev_time(hstack))

    # ---- bidirectional RNN, 2 layers (each fused fwd+bwd) ----
    x1 = fused_bidir_layer(emb, wih[0], whh[0], b[0])
    rnn_out = fused_bidir_layer(x1, wih[1], whh[1], b[1])

    # ---- MLP head: Linear -> ReLU -> Linear ----
    hdn = jnp.dot(rnn_out, w1, preferred_element_type=jnp.float32) + b1
    hdn = jnp.maximum(hdn, 0.0)
    y = jnp.dot(hdn, w2, preferred_element_type=jnp.float32) + b2
    # NOTE: output kept at (L, H) = (8, 32); the masked-store cost is negligible at
    # this size and an in-kernel (8,32)->(2,128) relayout would cost more than it saves.
    out_ref[...] = y.astype(out_ref.dtype)


# -----------------------------------------------------------------------------
# One-time parameter fusion + packing (OFF the hot path).
# -----------------------------------------------------------------------------
def pack_params(emb, wih, whh, b, w1, b1, w2, b2):
    """Fuse per-direction RNN weights and pack everything into one lane-dense slab.

    emb : (L, H)       embedding table (seq_indices == arange(L) => lookup is identity)
    wih : (4, H, H2)   input->hidden weights, (in, out) layout,
                       order [l0_fwd, l0_bwd, l1_fwd, l1_bwd]
    whh : (4, H2, H2)  hidden->hidden weights, (in, out) layout
    b   : (4, 1, H2)   b_ih + b_hh per direction
    w1, b1, w2, b2     MLP head, weights in (in, out) layout
    Returns a (R, 4H) f32 slab, R a multiple of 8 (lane-dense: 4H == 128 for H == 32).
    """
    L, H = emb.shape
    H2 = whh.shape[-1]
    assert H == 2 * H2
    f32 = jnp.float32

    zero = jnp.zeros((H2, H2), f32)
    wih_f = [jnp.concatenate([wih[2 * l], wih[2 * l + 1]], axis=-1) for l in range(2)]
    whh_f = [jnp.block([[whh[2 * l], zero], [zero, whh[2 * l + 1]]]) for l in range(2)]
    b_f = [jnp.concatenate([b[2 * l], b[2 * l + 1]], axis=-1) for l in range(2)]

    band0 = jnp.concatenate([wih_f[0], whh_f[0], wih_f[1], whh_f[1]], axis=-1)  # (H, 4H)
    band1 = jnp.concatenate([w1, w2, jnp.zeros((H, 2 * H), f32)], axis=-1)      # (H, 4H)
    band2 = jnp.concatenate([emb, jnp.zeros((L, 3 * H), f32)], axis=-1)         # (L, 4H)
    band3 = jnp.concatenate([b_f[0], b_f[1], b1, b2], axis=-1)                  # (1, 4H)
    slab = jnp.concatenate([band0, band1, band2, band3], axis=0).astype(f32)

    pad = (-slab.shape[0]) % 8                              # pad rows to multiple of 8
    if pad:
        slab = jnp.concatenate([slab, jnp.zeros((pad, 4 * H), f32)], axis=0)
    return slab


def make_prompt_encoder(L, H):
    """Build the jitted hot-path callable: slab -> (L, H) output."""
    kernel = functools.partial(prompt_encoder_kernel, seq_len=L, hidden=H)
    vmem = pl.BlockSpec(memory_space=pltpu.MemorySpace.VMEM)
    call = pl.pallas_call(
        kernel,
        out_shape=jax.ShapeDtypeStruct((L, H), jnp.float32),
        in_specs=[vmem],          # ONE input DMA (packed slab)
        out_specs=vmem,
    )
    return jax.jit(call)


# -----------------------------------------------------------------------------
# Pure-JAX reference (mirrors torch nn.RNN / nn.Linear semantics exactly)
# -----------------------------------------------------------------------------
def reference_forward(emb, wih, whh, b, w1, b1, w2, b2):
    L = emb.shape[0]
    H2 = whh.shape[-1]

    def run_dir(x, wih_d, whh_d, b_d, reverse):
        z = x @ wih_d + b_d
        h = jnp.zeros((1, H2), jnp.float32)
        out = [None] * L
        order = range(L - 1, -1, -1) if reverse else range(L)
        for t in order:
            h = jnp.tanh(z[t:t + 1] + h @ whh_d)
            out[t] = h
        return jnp.concatenate(out, axis=0)

    x0 = emb
    x1 = jnp.concatenate(
        [run_dir(x0, wih[0], whh[0], b[0], False),
         run_dir(x0, wih[1], whh[1], b[1], True)], axis=-1)
    rnn_out = jnp.concatenate(
        [run_dir(x1, wih[2], whh[2], b[2], False),
         run_dir(x1, wih[3], whh[3], b[3], True)], axis=-1)
    hdn = jnp.maximum(rnn_out @ w1 + b1, 0.0)
    return hdn @ w2 + b2


# -----------------------------------------------------------------------------
# Main
# -----------------------------------------------------------------------------
if __name__ == "__main__":
    # template = (3, 3, 2) -> spell_length L = 8; hidden_size H = 32 (even, H2 = 16)
    template = (3, 3, 2)
    L = sum(template)
    H = 32
    H2 = H // 2

    key = jax.random.PRNGKey(0)
    keys = jax.random.split(key, 16)

    # Embedding table (nn.Embedding init ~ N(0,1)); seq_indices = arange(L), so the
    # lookup is just the table itself.
    emb = jax.random.normal(keys[0], (L, H), dtype=jnp.float32)

    # RNN weights. PyTorch nn.RNN inits U(-1/sqrt(H2), 1/sqrt(H2)).
    # Leading-axis order: [layer0_fwd, layer0_bwd, layer1_fwd, layer1_bwd].
    # Both layers have input dim H (layer1 input = concat of 2*H2 = H).
    bound = 1.0 / jnp.sqrt(jnp.float32(H2))
    uni = lambda k, shp: jax.random.uniform(k, shp, jnp.float32, -bound, bound)

    wih = uni(keys[1], (4, H, H2))           # already (in, out) layout
    whh = uni(keys[2], (4, H2, H2))
    b_ih = uni(keys[3], (4, 1, H2))
    b_hh = uni(keys[4], (4, 1, H2))
    b = b_ih + b_hh                          # biases only ever appear summed

    # MLP head (nn.Linear init U(-1/sqrt(in), 1/sqrt(in))), stored transposed (in, out).
    lb = 1.0 / jnp.sqrt(jnp.float32(H))
    w1 = jax.random.uniform(keys[5], (H, H), jnp.float32, -lb, lb)
    b1 = jax.random.uniform(keys[6], (1, H), jnp.float32, -lb, lb)
    w2 = jax.random.uniform(keys[7], (H, H), jnp.float32, -lb, lb)
    b2 = jax.random.uniform(keys[8], (1, H), jnp.float32, -lb, lb)

    # One-time packing (weights never change between calls) -> hot path is a single
    # jitted pallas_call taking one pre-packed slab.
    slab = jax.block_until_ready(pack_params(emb, wih, whh, b, w1, b1, w2, b2))
    forward = make_prompt_encoder(L, H)

    out = jax.block_until_ready(forward(slab))

    ref = reference_forward(emb, wih, whh, b, w1, b1, w2, b2)
    assert out.shape == (L, H), out.shape
    assert jnp.allclose(out, ref, rtol=1e-4, atol=1e-5), (
        float(jnp.max(jnp.abs(out - ref))))

    print("KERNEL_OK")
</pallas_src>

<mosaic_0001>
module attributes {stable_mosaic.version = 11 : i64} {
  func.func @prompt_encoder_kernel(%arg0: memref<80x128xf32, #tpu.memory_space<vmem>>, %arg1: memref<8x32xf32, #tpu.memory_space<vmem>>) attributes {dimension_semantics = [], scalar_prefetch = 0 : i64, scratch_operands = 0 : i64, tpu.core_type = #tpu.core_type<tc>} {
    %c0 = arith.constant 0 : index
    %c0_0 = arith.constant 0 : index
    %0 = vector.load %arg0[%c0, %c0_0] : memref<80x128xf32, #tpu.memory_space<vmem>>, vector<80x128xf32>
    %1 = vector.extract_strided_slice %0 {offsets = [0, 0], sizes = [32, 128], strides = [1, 1]} : vector<80x128xf32> to vector<32x128xf32>
    %2 = vector.extract_strided_slice %1 {offsets = [0, 0], sizes = [32, 32], strides = [1, 1]} : vector<32x128xf32> to vector<32x32xf32>
    %3 = vector.extract_strided_slice %1 {offsets = [0, 64], sizes = [32, 32], strides = [1, 1]} : vector<32x128xf32> to vector<32x32xf32>
    %4 = vector.extract_strided_slice %1 {offsets = [0, 32], sizes = [32, 32], strides = [1, 1]} : vector<32x128xf32> to vector<32x32xf32>
    %5 = vector.extract_strided_slice %1 {offsets = [0, 96], sizes = [32, 32], strides = [1, 1]} : vector<32x128xf32> to vector<32x32xf32>
    %6 = vector.extract_strided_slice %0 {offsets = [32, 0], sizes = [32, 128], strides = [1, 1]} : vector<80x128xf32> to vector<32x128xf32>
    %7 = vector.extract_strided_slice %6 {offsets = [0, 0], sizes = [32, 32], strides = [1, 1]} : vector<32x128xf32> to vector<32x32xf32>
    %8 = vector.extract_strided_slice %6 {offsets = [0, 32], sizes = [32, 32], strides = [1, 1]} : vector<32x128xf32> to vector<32x32xf32>
    %9 = vector.extract_strided_slice %0 {offsets = [64, 0], sizes = [8, 32], strides = [1, 1]} : vector<80x128xf32> to vector<8x32xf32>
    %10 = vector.extract_strided_slice %0 {offsets = [72, 0], sizes = [1, 128], strides = [1, 1]} : vector<80x128xf32> to vector<1x128xf32>
    %11 = vector.extract_strided_slice %10 {offsets = [0, 0], sizes = [1, 32], strides = [1, 1]} : vector<1x128xf32> to vector<1x32xf32>
    %12 = vector.extract_strided_slice %10 {offsets = [0, 32], sizes = [1, 32], strides = [1, 1]} : vector<1x128xf32> to vector<1x32xf32>
    %13 = vector.extract_strided_slice %10 {offsets = [0, 64], sizes = [1, 32], strides = [1, 1]} : vector<1x128xf32> to vector<1x32xf32>
    %14 = vector.extract_strided_slice %10 {offsets = [0, 96], sizes = [1, 32], strides = [1, 1]} : vector<1x128xf32> to vector<1x32xf32>
    %15 = tpu.iota {dimensions = array<i32: 1>} : vector<8x32xi32>
    %c16_i32 = arith.constant 16 : i32
    %16 = vector.broadcast %c16_i32 : i32 to vector<8x32xi32>
    %17 = arith.cmpi slt, %15, %16 : vector<8x32xi32>
    %18 = tpu.iota {dimensions = array<i32: 0>} : vector<8x8xi32>
    %19 = tpu.iota {dimensions = array<i32: 1>} : vector<8x8xi32>
    %20 = arith.addi %18, %19 : vector<8x8xi32>
    %c7_i32 = arith.constant 7 : i32
    %21 = vector.broadcast %c7_i32 : i32 to vector<8x8xi32>
    %22 = arith.cmpi eq, %20, %21 : vector<8x8xi32>
    %23 = arith.extui %22 : vector<8x8xi1> to vector<8x8xi32>
    %24 = arith.sitofp %23 : vector<8x8xi32> to vector<8x8xf32>
    %cst = arith.constant dense<0.000000e+00> : vector<8x32xf32>
    %25 = tpu.matmul %9, %2, %cst {dimension_numbers = #tpu.dot_dimension_numbers<[1], [0], [0], [1], [0, 0, 1, 1], [], []>} : vector<8x32xf32>, vector<32x32xf32>, vector<8x32xf32> -> vector<8x32xf32>
    %26 = vector.broadcast %11 : vector<1x32xf32> to vector<8x32xf32>
    %27 = arith.addf %25, %26 : vector<8x32xf32>
    %cst_1 = arith.constant dense<0.000000e+00> : vector<8x32xf32>
    %28 = tpu.matmul %24, %27, %cst_1 {dimension_numbers = #tpu.dot_dimension_numbers<[1], [0], [0], [1], [0, 0, 1, 1], [], []>} : vector<8x8xf32>, vector<8x32xf32>, vector<8x32xf32> -> vector<8x32xf32>
    %29 = arith.select %17, %27, %28 : vector<8x32xi1>, vector<8x32xf32>
    %30 = vector.extract_strided_slice %29 {offsets = [0, 0], sizes = [1, 32], strides = [1, 1]} : vector<8x32xf32> to vector<1x32xf32>
    %31 = math.tanh %30 : vector<1x32xf32>
    %32 = vector.extract_strided_slice %29 {offsets = [1, 0], sizes = [1, 32], strides = [1, 1]} : vector<8x32xf32> to vector<1x32xf32>
    %cst_2 = arith.constant dense<0.000000e+00> : vector<1x32xf32>
    %33 = tpu.matmul %31, %4, %cst_2 {dimension_numbers = #tpu.dot_dimension_numbers<[1], [0], [0], [1], [0, 0, 1, 1], [], []>} : vector<1x32xf32>, vector<32x32xf32>, vector<1x32xf32> -> vector<1x32xf32>
    %34 = arith.addf %32, %33 : vector<1x32xf32>
    %35 = math.tanh %34 : vector<1x32xf32>
    %36 = vector.extract_strided_slice %29 {offsets = [2, 0], sizes = [1, 32], strides = [1, 1]} : vector<8x32xf32> to vector<1x32xf32>
    %cst_3 = arith.constant dense<0.000000e+00> : vector<1x32xf32>
    %37 = tpu.matmul %35, %4, %cst_3 {dimension_numbers = #tpu.dot_dimension_numbers<[1], [0], [0], [1], [0, 0, 1, 1], [], []>} : vector<1x32xf32>, vector<32x32xf32>, vector<1x32xf32> -> vector<1x32xf32>
    %38 = arith.addf %36, %37 : vector<1x32xf32>
    %39 = math.tanh %38 : vector<1x32xf32>
    %40 = vector.extract_strided_slice %29 {offsets = [3, 0], sizes = [1, 32], strides = [1, 1]} : vector<8x32xf32> to vector<1x32xf32>
    %cst_4 = arith.constant dense<0.000000e+00> : vector<1x32xf32>
    %41 = tpu.matmul %39, %4, %cst_4 {dimension_numbers = #tpu.dot_dimension_numbers<[1], [0], [0], [1], [0, 0, 1, 1], [], []>} : vector<1x32xf32>, vector<32x32xf32>, vector<1x32xf32> -> vector<1x32xf32>
    %42 = arith.addf %40, %41 : vector<1x32xf32>
    %43 = math.tanh %42 : vector<1x32xf32>
    %44 = vector.extract_strided_slice %29 {offsets = [4, 0], sizes = [1, 32], strides = [1, 1]} : vector<8x32xf32> to vector<1x32xf32>
    %cst_5 = arith.constant dense<0.000000e+00> : vector<1x32xf32>
    %45 = tpu.matmul %43, %4, %cst_5 {dimension_numbers = #tpu.dot_dimension_numbers<[1], [0], [0], [1], [0, 0, 1, 1], [], []>} : vector<1x32xf32>, vector<32x32xf32>, vector<1x32xf32> -> vector<1x32xf32>
    %46 = arith.addf %44, %45 : vector<1x32xf32>
    %47 = math.tanh %46 : vector<1x32xf32>
    %48 = vector.extract_strided_slice %29 {offsets = [5, 0], sizes = [1, 32], strides = [1, 1]} : vector<8x32xf32> to vector<1x32xf32>
    %cst_6 = arith.constant dense<0.000000e+00> : vector<1x32xf32>
    %49 = tpu.matmul %47, %4, %cst_6 {dimension_numbers = #tpu.dot_dimension_numbers<[1], [0], [0], [1], [0, 0, 1, 1], [], []>} : vector<1x32xf32>, vector<32x32xf32>, vector<1x32xf32> -> vector<1x32xf32>
    %50 = arith.addf %48, %49 : vector<1x32xf32>
    %51 = math.tanh %50 : vector<1x32xf32>
    %52 = vector.extract_strided_slice %29 {offsets = [6, 0], sizes = [1, 32], strides = [1, 1]} : vector<8x32xf32> to vector<1x32xf32>
    %cst_7 = arith.constant dense<0.000000e+00> : vector<1x32xf32>
    %53 = tpu.matmul %51, %4, %cst_7 {dimension_numbers = #tpu.dot_dimension_numbers<[1], [0], [0], [1], [0, 0, 1, 1], [], []>} : vector<1x32xf32>, vector<32x32xf32>, vector<1x32xf32> -> vector<1x32xf32>
    %54 = arith.addf %52, %53 : vector<1x32xf32>
    %55 = math.tanh %54 : vector<1x32xf32>
    %56 = vector.extract_strided_slice %29 {offsets = [7, 0], sizes = [1, 32], strides = [1, 1]} : vector<8x32xf32> to vector<1x32xf32>
    %cst_8 = arith.constant dense<0.000000e+00> : vector<1x32xf32>
    %57 = tpu.matmul %55, %4, %cst_8 {dimension_numbers = #tpu.dot_dimension_numbers<[1], [0], [0], [1], [0, 0, 1, 1], [], []>} : vector<1x32xf32>, vector<32x32xf32>, vector<1x32xf32> -> vector<1x32xf32>
    %58 = arith.addf %56, %57 : vector<1x32xf32>
    %59 = math.tanh %58 : vector<1x32xf32>
    %60 = tpu.concatenate %31, %35, %39, %43, %47, %51, %55, %59 in 0 : vector<1x32xf32>, vector<1x32xf32>, vector<1x32xf32>, vector<1x32xf32>, vector<1x32xf32>, vector<1x32xf32>, vector<1x32xf32>, vector<1x32xf32> -> vector<8x32xf32>
    %cst_9 = arith.constant dense<0.000000e+00> : vector<8x32xf32>
    %61 = tpu.matmul %24, %60, %cst_9 {dimension_numbers = #tpu.dot_dimension_numbers<[1], [0], [0], [1], [0, 0, 1, 1], [], []>} : vector<8x8xf32>, vector<8x32xf32>, vector<8x32xf32> -> vector<8x32xf32>
    %62 = arith.select %17, %60, %61 : vector<8x32xi1>, vector<8x32xf32>
    %cst_10 = arith.constant dense<0.000000e+00> : vector<8x32xf32>
    %63 = tpu.matmul %62, %3, %cst_10 {dimension_numbers = #tpu.dot_dimension_numbers<[1], [0], [0], [1], [0, 0, 1, 1], [], []>} : vector<8x32xf32>, vector<32x32xf32>, vector<8x32xf32> -> vector<8x32xf32>
    %64 = vector.broadcast %12 : vector<1x32xf32> to vector<8x32xf32>
    %65 = arith.addf %63, %64 : vector<8x32xf32>
    %cst_11 = arith.constant dense<0.000000e+00> : vector<8x32xf32>
    %66 = tpu.matmul %24, %65, %cst_11 {dimension_numbers = #tpu.dot_dimension_numbers<[1], [0], [0], [1], [0, 0, 1, 1], [], []>} : vector<8x8xf32>, vector<8x32xf32>, vector<8x32xf32> -> vector<8x32xf32>
    %67 = arith.select %17, %65, %66 : vector<8x32xi1>, vector<8x32xf32>
    %68 = vector.extract_strided_slice %67 {offsets = [0, 0], sizes = [1, 32], strides = [1, 1]} : vector<8x32xf32> to vector<1x32xf32>
    %69 = math.tanh %68 : vector<1x32xf32>
    %70 = vector.extract_strided_slice %67 {offsets = [1, 0], sizes = [1, 32], strides = [1, 1]} : vector<8x32xf32> to vector<1x32xf32>
    %cst_12 = arith.constant dense<0.000000e+00> : vector<1x32xf32>
    %71 = tpu.matmul %69, %5, %cst_12 {dimension_numbers = #tpu.dot_dimension_numbers<[1], [0], [0], [1], [0, 0, 1, 1], [], []>} : vector<1x32xf32>, vector<32x32xf32>, vector<1x32xf32> -> vector<1x32xf32>
    %72 = arith.addf %70, %71 : vector<1x32xf32>
    %73 = math.tanh %72 : vector<1x32xf32>
    %74 = vector.extract_strided_slice %67 {offsets = [2, 0], sizes = [1, 32], strides = [1, 1]} : vector<8x32xf32> to vector<1x32xf32>
    %cst_13 = arith.constant dense<0.000000e+00> : vector<1x32xf32>
    %75 = tpu.matmul %73, %5, %cst_13 {dimension_numbers = #tpu.dot_dimension_numbers<[1], [0], [0], [1], [0, 0, 1, 1], [], []>} : vector<1x32xf32>, vector<32x32xf32>, vector<1x32xf32> -> vector<1x32xf32>
    %76 = arith.addf %74, %75 : vector<1x32xf32>
    %77 = math.tanh %76 : vector<1x32xf32>
    %78 = vector.extract_strided_slice %67 {offsets = [3, 0], sizes = [1, 32], strides = [1, 1]} : vector<8x32xf32> to vector<1x32xf32>
    %cst_14 = arith.constant dense<0.000000e+00> : vector<1x32xf32>
    %79 = tpu.matmul %77, %5, %cst_14 {dimension_numbers = #tpu.dot_dimension_numbers<[1], [0], [0], [1], [0, 0, 1, 1], [], []>} : vector<1x32xf32>, vector<32x32xf32>, vector<1x32xf32> -> vector<1x32xf32>
    %80 = arith.addf %78, %79 : vector<1x32xf32>
    %81 = math.tanh %80 : vector<1x32xf32>
    %82 = vector.extract_strided_slice %67 {offsets = [4, 0], sizes = [1, 32], strides = [1, 1]} : vector<8x32xf32> to vector<1x32xf32>
    %cst_15 = arith.constant dense<0.000000e+00> : vector<1x32xf32>
    %83 = tpu.matmul %81, %5, %cst_15 {dimension_numbers = #tpu.dot_dimension_numbers<[1], [0], [0], [1], [0, 0, 1, 1], [], []>} : vector<1x32xf32>, vector<32x32xf32>, vector<1x32xf32> -> vector<1x32xf32>
    %84 = arith.addf %82, %83 : vector<1x32xf32>
    %85 = math.tanh %84 : vector<1x32xf32>
    %86 = vector.extract_strided_slice %67 {offsets = [5, 0], sizes = [1, 32], strides = [1, 1]} : vector<8x32xf32> to vector<1x32xf32>
    %cst_16 = arith.constant dense<0.000000e+00> : vector<1x32xf32>
    %87 = tpu.matmul %85, %5, %cst_16 {dimension_numbers = #tpu.dot_dimension_numbers<[1], [0], [0], [1], [0, 0, 1, 1], [], []>} : vector<1x32xf32>, vector<32x32xf32>, vector<1x32xf32> -> vector<1x32xf32>
    %88 = arith.addf %86, %87 : vector<1x32xf32>
    %89 = math.tanh %88 : vector<1x32xf32>
    %90 = vector.extract_strided_slice %67 {offsets = [6, 0], sizes = [1, 32], strides = [1, 1]} : vector<8x32xf32> to vector<1x32xf32>
    %cst_17 = arith.constant dense<0.000000e+00> : vector<1x32xf32>
    %91 = tpu.matmul %89, %5, %cst_17 {dimension_numbers = #tpu.dot_dimension_numbers<[1], [0], [0], [1], [0, 0, 1, 1], [], []>} : vector<1x32xf32>, vector<32x32xf32>, vector<1x32xf32> -> vector<1x32xf32>
    %92 = arith.addf %90, %91 : vector<1x32xf32>
    %93 = math.tanh %92 : vector<1x32xf32>
    %94 = vector.extract_strided_slice %67 {offsets = [7, 0], sizes = [1, 32], strides = [1, 1]} : vector<8x32xf32> to vector<1x32xf32>
    %cst_18 = arith.constant dense<0.000000e+00> : vector<1x32xf32>
    %95 = tpu.matmul %93, %5, %cst_18 {dimension_numbers = #tpu.dot_dimension_numbers<[1], [0], [0], [1], [0, 0, 1, 1], [], []>} : vector<1x32xf32>, vector<32x32xf32>, vector<1x32xf32> -> vector<1x32xf32>
    %96 = arith.addf %94, %95 : vector<1x32xf32>
    %97 = math.tanh %96 : vector<1x32xf32>
    %98 = tpu.concatenate %69, %73, %77, %81, %85, %89, %93, %97 in 0 : vector<1x32xf32>, vector<1x32xf32>, vector<1x32xf32>, vector<1x32xf32>, vector<1x32xf32>, vector<1x32xf32>, vector<1x32xf32>, vector<1x32xf32> -> vector<8x32xf32>
    %cst_19 = arith.constant dense<0.000000e+00> : vector<8x32xf32>
    %99 = tpu.matmul %24, %98, %cst_19 {dimension_numbers = #tpu.dot_dimension_numbers<[1], [0], [0], [1], [0, 0, 1, 1], [], []>} : vector<8x8xf32>, vector<8x32xf32>, vector<8x32xf32> -> vector<8x32xf32>
    %100 = arith.select %17, %98, %99 : vector<8x32xi1>, vector<8x32xf32>
    %cst_20 = arith.constant dense<0.000000e+00> : vector<8x32xf32>
    %101 = tpu.matmul %100, %7, %cst_20 {dimension_numbers = #tpu.dot_dimension_numbers<[1], [0], [0], [1], [0, 0, 1, 1], [], []>} : vector<8x32xf32>, vector<32x32xf32>, vector<8x32xf32> -> vector<8x32xf32>
    %102 = vector.broadcast %13 : vector<1x32xf32> to vector<8x32xf32>
    %103 = arith.addf %101, %102 : vector<8x32xf32>
    %cst_21 = arith.constant 0.000000e+00 : f32
    %104 = vector.broadcast %cst_21 : f32 to vector<8x32xf32>
    %105 = arith.maximumf %103, %104 : vector<8x32xf32>
    %cst_22 = arith.constant dense<0.000000e+00> : vector<8x32xf32>
    %106 = tpu.matmul %105, %8, %cst_22 {dimension_numbers = #tpu.dot_dimension_numbers<[1], [0], [0], [1], [0, 0, 1, 1], [], []>} : vector<8x32xf32>, vector<32x32xf32>, vector<8x32xf32> -> vector<8x32xf32>
    %107 = vector.broadcast %14 : vector<1x32xf32> to vector<8x32xf32>
    %108 = arith.addf %106, %107 : vector<8x32xf32>
    %c0_23 = arith.constant 0 : index
    %c0_24 = arith.constant 0 : index
    %109 = vector.load %arg1[%c0_23, %c0_24] : memref<8x32xf32, #tpu.memory_space<vmem>>, vector<8x32xf32>
    tpu.vector_store %arg1[%c0_23, %c0_24], %108 {strides = array<i32>} : memref<8x32xf32, #tpu.memory_space<vmem>>, vector<8x32xf32>,
    return
  }
}

</mosaic_0001>

<bundles_post_ra>
// kernel: tpu_custom_call.1
= control target key start
LH: loop header
LB: loop body
LE: loop exit
PB: predicated region body
PF: predicated region fallthrough
CT: control target
= control target key end

     0   :  { %6 = vsyncpa [#allocation3], 0  ;;  %s2681_s0 = inlined_call_operand.hbm [shape: f32[80,128], index: 0, kind: input, shape index: {}]   ;;  %s2682_s1 = inlined_call_operand.hbm [shape: f32[8,32], index: 1, kind: output, shape index: {}]  }
   0x1   :  { %7 = vsyncpa [#allocation4], 0  ;;  %s2414_s6 = smov [#allocation2]   ;;  %s2366_s10 = scalar_lea.hbm %s2681_s0, 1280 }
   0x2   :  { %s13_s7 = sshll.u32 %s2414_s6, 4  ;;  %p2367_p0 = scmp.ne.s32.totalorder %s2681_s0, %s2366_s10  ;;  %s14_s7 = int_to_ptr.vmem [resolvable:$true] %s13_s7 }
   0x3   :  { %p2370_p1 = scmp.lt.u32.totalorder %s2366_s10, %s2681_s0 }
   0x5   :  { %p2372_p2 = pnand %p2370_p1, %p2367_p0 }
   0x7   :  { %2375 = shalt.err (!%p2372_p2)
}
   0x8   :  { %s2376_s15 = scalar_lea.vmem %s14_s7, 1280  ;;  %p2381_p4 = scmp.lt.s32.totalorder %s14_s7, %s14_s7 }
   0x9   :  { %p2377_p3 = scmp.ne.s32.totalorder %s14_s7, %s2376_s15  ;;  %p2382_p5 = scmp.lt.s32.totalorder %s2376_s15, %s2376_s15 }
   0xb   :  { %p2383_p6 = por %p2382_p5, %p2381_p4 }
   0xd   :  { %p2384_p7 = pnand %p2383_p6, %p2377_p3 }
   0xf   :  { %2387 = shalt.err (!%p2384_p7)
}
  0x10   :  { %s2415_s16 = smov 128   ;;  %s2416_s17 = smov 8  }
  0x11   :  { %19 = dma.hbm_to_vmem [thread:$0]  %s2681_s0, 1280, %s14_s7, [#allocation3], %s2415_s16, %s2415_s16, %s2416_s17  }
  0x12   :  { %2410 = dma.done.wait [#allocation3], 1280  }
  0x13   :  { %2411 = vsyncadd [#allocation3], 4294966016  ;;  %v2417_v0 = vmov 0.0|0.0   ;;  %vm2418_vm0 = vmmov 0   ;;  %v2419_v1 = vmov 0.0   ;;  %v23_v2 = vld [vmem:[#allocation2] sm:$0xff]  ;;  %v33_v9 = vlaneseq }
  0x14   :  { %2176 = vmatprep.subr.bf16.mxu0 %v2417_v0  ;;  %1966 = vmatprep.mubr.msk.f32.mxu0 %vm2418_vm0, %v2419_v1  ;;  %v24_v3 = vld [vmem:[#allocation2 + $0x8] sm:$0xff]  ;;  %v25_v4 = vld [vmem:[#allocation2 + $0x10] sm:$0xff]  ;;  %v26_v6 = vld [vmem:[#allocation2 + $0x18] sm:$0xff]  ;;  %vm46_vm1 = vcmask 261120   ;;  %s2420_s0 = smov 96   ;;  %vm120_vm3 = vcmask 64512  }
  0x15   :  { %1969 = vmatprep.subr.mxu1 %v2419_v1  ;;  %1971 = vmatprep.mubr.msk.f32.mxu1 %vm2418_vm0, %v2419_v1  ;;  %v2177_v5 = vpack.c.bf16 %v24_v3, %v23_v2  ;;  %v2180_v7 = vpack.c.bf16 %v26_v6, %v25_v4  ;;  %v31_v8 = vld [vmem:[#allocation2 + $0x40] sm:$0xff]  ;;  %v37_v10 = vshrl.u32 %v33_v9, 7  ;;  %v2457_v11 = vpack.i.bf16 %v24_v3, %v23_v2  ;;  %v32_v14 = vld [vmem:[#allocation2 + $0x48] sm:$0xff]  ;;  %s2421_s20 = smov 64   ;;  %s2422_s21 = smov 32  }
  0x16   :  { %v2461_v12 = vpack.i.bf16 %v26_v6, %v25_v4  ;;  %v2469_v16 = vand.u32 127, %v33_v9  ;;  %vm764_vm5 = vcmask 1040384   ;;  %vm766_vm6 = vcmask 1041408   ;;  %s2423_s22 = smov [#allocation5]  }
  0x17   :  { %2178 = vmatpush3.bf16.msra.mxu0 %v2177_v5  ;;  %2295 = vrot.lane.b32.xlu0 %v2457_v11, %s2420_s0  ;;  %v44_v13 = vsub.s32 0, %v37_v10  ;;  %vm768_vm7 = vcmask 1042432   ;;  %vm770_vm8 = vcmask 1043456   ;;  %vm772_vm9 = vcmask 1044480   ;;  %s1828_s23 = sshll.u32 %s2423_s22, 4  ;;  %s1829_s23 = int_to_ptr.vmem [resolvable:$true] %s1828_s23 }
  0x18   :  { %2179 = vmatprep.subr.bf16.mxu0 %v2417_v0  ;;  %v38_v20 = vadd.s32 %v37_v10, %v2469_v16  ;;  %vm35_vm4 = vcmp.lt.s32.totalorder %v2469_v16, 16  ;;  %vm774_vm10 = vcmask 1045504   ;;  %2305 = vrot.lane.b32.xlu1 %v2457_v11, %s2421_s20  ;;  %vm776_vm11 = vcmask 1046528   ;;  %s2388_s24 = scalar_lea.vmem %s1829_s23, 128  ;;  %p2393_p9 = scmp.lt.s32.totalorder %s1829_s23, %s1829_s23 }
  0x19   :  { %v2465_v15 = vrot.slane %v32_v14, %v44_v13  ;;  %p2389_p8 = scmp.ne.s32.totalorder %s1829_s23, %s2388_s24  ;;  %p2394_p10 = scmp.lt.s32.totalorder %s2388_s24, %s2388_s24 }
  0x1a   :  { %vm39_vm2 = vcmp.eq.s32.totalorder %v38_v20, 7 }
  0x1b   :  { %2181 = vmatpush3.bf16.msra.mxu0 %v2180_v7  ;;  %2300 = vrot.lane.b32.xlu0 %v2461_v12, %s2420_s0  ;;  %v2478_v25 = vsel %vm39_vm2, 1.0, %v2419_v1  ;;  %p2395_p11 = por %p2394_p10, %p2393_p9 }
  0x1c   :  { %2188 = vmatprep.subr.bf16.mxu0 %v2417_v0  ;;  %2310 = vrot.lane.b32.xlu1 %v2461_v12, %s2421_s20 }
  0x1d   :  { %p2396_p12 = pnand %p2395_p11, %p2389_p8 }
  0x1e   :  { %1967 = vmatmul.mubr.msk.f32.vlgmr.msra.gmra.mrb[0].mxu0 %vm46_vm1, %v31_v8 }
  0x1f   :  { %1993 = vmatprep.mubr.msk.f32.mxu0 %vm2418_vm0, %v2419_v1  ;;  %862 = vrot.lane.b32.xlu0 %v2465_v15, %s2420_s0 }
  0x20   :  { %2315 = vrot.lane.b32.xlu1 %v2457_v11, %s2422_s21 }
  0x23   :  { %2320 = vrot.lane.b32.xlu0 %v2461_v12, %s2422_s21 }
  0x89   :  { %v2296_v17 = vpop.permute.xlu0 %2295 }
  0x8a   :  { %v2298_v18 = vunpack.i.h.bf16 %v2296_v17  ;;  %v2297_v19 = vunpack.i.l.bf16 %v2296_v17 }
  0x8c   :  { %v2472_v21 = vpack.c.bf16 %v2298_v18, %v2297_v19 }
  0x8d   :  { %v2301_v26 = vpop.permute.xlu0 %2300 }
  0x8e   :  { %2190 = vmatpush3.bf16.msra.mxu0 %v2472_v21  ;;  %v2303_v27 = vunpack.i.h.bf16 %v2301_v26  ;;  %v2302_v28 = vunpack.i.l.bf16 %v2301_v26 }
  0x8f   :  { %2191 = vmatprep.subr.bf16.mxu0 %v2417_v0 }
  0x90   :  { %v2487_v29 = vpack.c.bf16 %v2303_v27, %v2302_v28 }
  0x92   :  { %2193 = vmatpush3.bf16.msra.mxu0 %v2487_v29 }
  0x93   :  { %2200 = vmatprep.subr.bf16.mxu0 %v2417_v0 }
  0xf1   :  { %v116_v22 = vpop.f32.mrb[0].mxu0 }
  0xf2   :  { %v117_v23 = vadd.f32 %v116_v22, %v2465_v15  ;;  %v1968_v24 = vpop.f32.mrb[1].mxu0  ;;  %v2306_v22 = vpop.permute.xlu1 %2305 }
  0xf3   :  { %v2307_v24 = vunpack.i.l.bf16 %v2306_v22 }
  0xf4   :  { %1970 = vmatpush3.msra.mxu1 %v117_v23 }
  0xf5   :  { %1972 = vmatmul.mubr.msk.f32.vlgmr.msra.gmra.mrb[0].mxu1 %vm120_vm3, %v2478_v25  ;;  %2182 = vmatprep.subr.bf16.mxu1 %v2417_v0 }
  0xf6   :  { %2184 = vmatpush3.bf16.msra.mxu1 %v2472_v21  ;;  %1982 = vmatprep.mubr.msk.f32.mxu1 %vm2418_vm0, %v2419_v1  ;;  %v2311_v27 = vpop.permute.xlu1 %2310 }
  0xf7   :  { %2185 = vmatprep.subr.bf16.mxu1 %v2417_v0  ;;  %v2313_v28 = vunpack.i.h.bf16 %v2311_v27 }
  0xfa   :  { %2187 = vmatpush3.bf16.msra.mxu1 %v2487_v29 }
  0xfb   :  { %2194 = vmatprep.subr.bf16.mxu1 %v2417_v0 }
 0x1c8   :  { %v190_v30 = vpop.f32.mrb[0].mxu1 }
 0x1c9   :  { %v2496_v31 = vsel %vm35_vm4, %v117_v23, %v190_v30  ;;  %v1973_v32 = vpop.f32.mrb[1].mxu1  ;;  %v2308_v23 = vunpack.i.h.bf16 %v2306_v22 }
 0x1ca   :  { %2334 = vtanh.f32 %v2496_v31 }
 0x1cb   :  { %v2225_v26 = vpack.c.bf16 %v2308_v23, %v2307_v24 }
 0x1d4   :  { %v2335_v33 = vpop.eup %2334 }
 0x1d5   :  { %1983 = vmatmul.mubr.msk.f32.vlgmr.msra.gmra.mrb[2].mxu1 %vm46_vm1, %v2335_v33 }
 0x1d6   :  { %2196 = vmatpush3.bf16.msra.mxu1 %v2472_v21  ;;  %2004 = vmatprep.mubr.msk.f32.mxu1 %vm2418_vm0, %v2419_v1 }
 0x1d7   :  { %2197 = vmatprep.subr.bf16.mxu1 %v2417_v0 }
 0x1da   :  { %2199 = vmatpush3.bf16.msra.mxu1 %v2487_v29 }
 0x1db   :  { %2206 = vmatprep.subr.bf16.mxu1 %v2417_v0 }
 0x2a8   :  { %v281_v34 = vpop.f32.mrb[2].mxu1 }
 0x2a9   :  { %v286_v35 = vrot.slane %v281_v34, 7  ;;  %v1984_v36 = vpop.f32.mrb[3].mxu1 }
 0x2aa   :  { %v2316_v36 = vpop.permute.xlu1 %2315 }
 0x2ab   :  { %v288_v37 = vadd.f32 %v286_v35, %v2496_v31 }
 0x2ad   :  { %2336 = vtanh.f32 %v288_v37  ;;  %v2318_v37 = vunpack.i.h.bf16 %v2316_v36 }
 0x2b7   :  { %v2337_v38 = vpop.eup %2336 }
 0x2b8   :  { %v291_v39 = vrot.slane %v2337_v38, 1  ;;  %v765_v45 = vsel %vm764_vm5, %v2335_v33, %v2337_v38  ;;  %v2317_v38 = vunpack.i.l.bf16 %v2316_v36 }
 0x2ba   :  { %1994 = vmatmul.mubr.msk.f32.vlgmr.msra.gmra.mrb[2].mxu0 %vm46_vm1, %v291_v39  ;;  %v2574_v39 = vpack.c.bf16 %v2318_v37, %v2317_v38 }
 0x2bb   :  { %2202 = vmatpush3.bf16.msra.mxu0 %v2472_v21  ;;  %2015 = vmatprep.mubr.msk.f32.mxu0 %vm2418_vm0, %v2419_v1 }
 0x2bc   :  { %2203 = vmatprep.subr.bf16.mxu0 %v2417_v0 }
 0x2bf   :  { %2205 = vmatpush3.bf16.msra.mxu0 %v2487_v29 }
 0x2c0   :  { %2212 = vmatprep.subr.bf16.mxu0 %v2417_v0 }
 0x38d   :  { %v360_v40 = vpop.f32.mrb[2].mxu0 }
 0x38e   :  { %v365_v41 = vrot.slane %v360_v40, 6  ;;  %v1995_v42 = vpop.f32.mrb[3].mxu0  ;;  %v863_v40 = vpop.permute.xlu0 %862 }
 0x390   :  { %v367_v43 = vadd.f32 %v365_v41, %v2496_v31 }
 0x392   :  { %2338 = vtanh.f32 %v367_v43  ;;  %v2321_v11 = vpop.permute.xlu0 %2320 }
 0x393   :  { %v2323_v12 = vunpack.i.h.bf16 %v2321_v11 }
 0x39c   :  { %v2339_v44 = vpop.eup %2338 }
 0x39d   :  { %v370_v46 = vrot.slane %v2339_v44, 2  ;;  %v767_v47 = vsel %vm766_vm6, %v765_v45, %v2339_v44  ;;  %v2322_v44 = vunpack.i.l.bf16 %v2321_v11  ;;  %v29_v11 = vld [vmem:[#allocation2 + $0x30] sm:$0xff] }
 0x39f   :  { %2005 = vmatmul.mubr.msk.f32.vlgmr.msra.gmra.mrb[4].mxu1 %vm46_vm1, %v370_v46  ;;  %v2585_v45 = vpack.c.bf16 %v2323_v12, %v2322_v44  ;;  %v30_v12 = vld [vmem:[#allocation2 + $0x38] sm:$0xff] }
 0x3a0   :  { %2208 = vmatpush3.bf16.msra.mxu1 %v2472_v21  ;;  %2026 = vmatprep.mubr.msk.f32.mxu1 %vm2418_vm0, %v2419_v1  ;;  %v2276_v44 = vpack.c.bf16 %v30_v12, %v29_v11 }
 0x3a1   :  { %2209 = vmatprep.subr.bf16.mxu1 %v2417_v0 }
 0x3a4   :  { %2211 = vmatpush3.bf16.msra.mxu1 %v2487_v29 }
 0x3a5   :  { %2218 = vmatprep.subr.bf16.mxu1 %v2417_v0 }
 0x472   :  { %v439_v48 = vpop.f32.mrb[4].mxu1 }
 0x473   :  { %v444_v49 = vrot.slane %v439_v48, 5  ;;  %v2006_v50 = vpop.f32.mrb[5].mxu1 }
 0x475   :  { %v446_v51 = vadd.f32 %v444_v49, %v2496_v31 }
 0x477   :  { %2340 = vtanh.f32 %v446_v51 }
 0x481   :  { %v2341_v52 = vpop.eup %2340 }
 0x482   :  { %v449_v53 = vrot.slane %v2341_v52, 3  ;;  %v769_v54 = vsel %vm768_vm7, %v767_v47, %v2341_v52 }
 0x484   :  { %2016 = vmatmul.mubr.msk.f32.vlgmr.msra.gmra.mrb[4].mxu0 %vm46_vm1, %v449_v53 }
 0x485   :  { %2214 = vmatpush3.bf16.msra.mxu0 %v2472_v21  ;;  %2037 = vmatprep.mubr.msk.f32.mxu0 %vm2418_vm0, %v2419_v1 }
 0x486   :  { %2215 = vmatprep.subr.bf16.mxu0 %v2417_v0 }
 0x489   :  { %2217 = vmatpush3.bf16.msra.mxu0 %v2487_v29 }
 0x48a   :  { %2051 = vmatprep.subr.mxu0 %v2419_v1 }
 0x557   :  { %v518_v55 = vpop.f32.mrb[4].mxu0 }
 0x558   :  { %v523_v56 = vrot.slane %v518_v55, 4  ;;  %v2017_v57 = vpop.f32.mrb[5].mxu0 }
 0x55a   :  { %v525_v58 = vadd.f32 %v523_v56, %v2496_v31 }
 0x55c   :  { %2342 = vtanh.f32 %v525_v58 }
 0x566   :  { %v2343_v59 = vpop.eup %2342 }
 0x567   :  { %v528_v60 = vrot.slane %v2343_v59, 4  ;;  %v771_v61 = vsel %vm770_vm8, %v769_v54, %v2343_v59 }
 0x569   :  { %2027 = vmatmul.mubr.msk.f32.vlgmr.msra.gmra.mrb[6].mxu1 %vm46_vm1, %v528_v60 }
 0x56a   :  { %2220 = vmatpush3.bf16.msra.mxu1 %v2472_v21  ;;  %2048 = vmatprep.mubr.msk.f32.mxu1 %vm2418_vm0, %v2419_v1 }
 0x56b   :  { %2221 = vmatprep.subr.bf16.mxu1 %v2417_v0 }
 0x56e   :  { %2223 = vmatpush3.bf16.msra.mxu1 %v2487_v29  ;;  %v2312_v29 = vunpack.i.l.bf16 %v2311_v27 }
 0x56f   :  { %2224 = vmatprep.subr.bf16.mxu1 %v2417_v0 }
 0x570   :  { %v2228_v30 = vpack.c.bf16 %v2313_v28, %v2312_v29 }
 0x63c   :  { %v597_v62 = vpop.f32.mrb[6].mxu1 }
 0x63d   :  { %v602_v63 = vrot.slane %v597_v62, 3  ;;  %v2028_v2 = vpop.f32.mrb[7].mxu1 }
 0x63f   :  { %v604_v3 = vadd.f32 %v602_v63, %v2496_v31 }
 0x641   :  { %2344 = vtanh.f32 %v604_v3 }
 0x64b   :  { %v2345_v4 = vpop.eup %2344 }
 0x64c   :  { %v607_v5 = vrot.slane %v2345_v4, 5  ;;  %v773_v6 = vsel %vm772_vm9, %v771_v61, %v2345_v4 }
 0x64e   :  { %2038 = vmatmul.mubr.msk.f32.vlgmr.msra.gmra.mrb[6].mxu0 %vm46_vm1, %v607_v5 }
 0x64f   :  { %2053 = vmatprep.mubr.msk.f32.mxu0 %vm2418_vm0, %v2419_v1 }
 0x721   :  { %v676_v7 = vpop.f32.mrb[6].mxu0 }
 0x722   :  { %v681_v8 = vrot.slane %v676_v7, 2  ;;  %v2039_v9 = vpop.f32.mrb[7].mxu0 }
 0x724   :  { %v683_v10 = vadd.f32 %v681_v8, %v2496_v31 }
 0x726   :  { %2346 = vtanh.f32 %v683_v10 }
 0x730   :  { %v2347_v13 = vpop.eup %2346 }
 0x731   :  { %v686_v14 = vrot.slane %v2347_v13, 6  ;;  %v775_v17 = vsel %vm774_vm10, %v773_v6, %v2347_v13 }
 0x733   :  { %2049 = vmatmul.mubr.msk.f32.vlgmr.msra.gmra.mrb[8].mxu1 %vm46_vm1, %v686_v14 }
 0x734   :  { %2064 = vmatprep.mubr.msk.f32.mxu1 %vm2418_vm0, %v2419_v1  ;;  %2226 = vmatpush3.bf16.msra.mxu1 %v2225_v26 }
 0x735   :  { %2227 = vmatprep.subr.bf16.mxu1 %v2417_v0 }
 0x738   :  { %2229 = vmatpush3.bf16.msra.mxu1 %v2228_v30 }
 0x739   :  { %2236 = vmatprep.subr.bf16.mxu1 %v2417_v0 }
 0x806   :  { %v755_v18 = vpop.f32.mrb[8].mxu1 }
 0x807   :  { %v760_v19 = vrot.slane %v755_v18, 1  ;;  %v2050_v20 = vpop.f32.mrb[9].mxu1 }
 0x809   :  { %v762_v21 = vadd.f32 %v760_v19, %v2496_v31 }
 0x80b   :  { %2348 = vtanh.f32 %v762_v21 }
 0x815   :  { %v2349_v32 = vpop.eup %2348 }
 0x816   :  { %v777_v33 = vsel %vm776_vm11, %v775_v17, %v2349_v32 }
 0x817   :  { %2052 = vmatpush3.msra.mxu0 %v777_v33 }
 0x818   :  { %2054 = vmatmul.mubr.msk.f32.vlgmr.msra.gmra.mrb[8].mxu0 %vm120_vm3, %v2478_v25  ;;  %2067 = vmatprep.subr.mxu0 %v2419_v1 }
 0x819   :  { %2069 = vmatprep.mubr.msk.f32.mxu0 %vm2418_vm0, %v2419_v1 }
 0x8eb   :  { %v844_v31 = vpop.f32.mrb[8].mxu0 }
 0x8ec   :  { %v848_v34 = vsel %vm35_vm4, %v777_v33, %v844_v31  ;;  %v2055_v35 = vpop.f32.mrb[9].mxu0 }
 0x8ed   :  { %2065 = vmatmul.mubr.msk.f32.vlgmr.msra.gmra.mrb[10].mxu1 %vm46_vm1, %v848_v34 }
 0x8ee   :  { %2091 = vmatprep.mubr.msk.f32.mxu1 %vm2418_vm0, %v2419_v1  ;;  %2238 = vmatpush3.bf16.msra.mxu1 %v2574_v39 }
 0x8ef   :  { %2239 = vmatprep.subr.bf16.mxu1 %v2417_v0 }
 0x8f2   :  { %2241 = vmatpush3.bf16.msra.mxu1 %v2585_v45 }
 0x8f3   :  { %2248 = vmatprep.subr.bf16.mxu1 %v2417_v0 }
 0x9c0   :  { %v934_v41 = vpop.f32.mrb[10].mxu1 }
 0x9c1   :  { %v935_v42 = vadd.f32 %v934_v41, %v863_v40  ;;  %v2066_v43 = vpop.f32.mrb[11].mxu1  ;;  %v28_v40 = vld [vmem:[#allocation2 + $0x28] sm:$0xff] }
 0x9c3   :  { %2068 = vmatpush3.msra.mxu0 %v935_v42 }
 0x9c4   :  { %2070 = vmatmul.mubr.msk.f32.vlgmr.msra.gmra.mrb[10].mxu0 %vm120_vm3, %v2478_v25  ;;  %2230 = vmatprep.subr.bf16.mxu0 %v2417_v0 }
 0x9c5   :  { %2232 = vmatpush3.bf16.msra.mxu0 %v2574_v39  ;;  %2080 = vmatprep.mubr.msk.f32.mxu0 %vm2418_vm0, %v2419_v1 }
 0x9c6   :  { %2233 = vmatprep.subr.bf16.mxu0 %v2417_v0 }
 0x9c9   :  { %2235 = vmatpush3.bf16.msra.mxu0 %v2585_v45 }
 0x9ca   :  { %2242 = vmatprep.subr.bf16.mxu0 %v2417_v0 }
 0xa97   :  { %v1004_v46 = vpop.f32.mrb[10].mxu0 }
 0xa98   :  { %v2593_v47 = vsel %vm35_vm4, %v935_v42, %v1004_v46  ;;  %v2071_v48 = vpop.f32.mrb[11].mxu0  ;;  %v2329_v46 = vpack.i.bf16 %v30_v12, %v29_v11 }
 0xa99   :  { %2350 = vtanh.f32 %v2593_v47 }
 0xa9a   :  { %2330 = vrot.lane.b32.xlu0 %v2329_v46, %s2420_s0 }
 0xa9e   :  { %1745 = vrot.lane.b32.xlu0 %v2465_v15, %s2422_s21 }
 0xaa3   :  { %v2351_v49 = vpop.eup %2350 }
 0xaa4   :  { %2081 = vmatmul.mubr.msk.f32.vlgmr.msra.gmra.mrb[12].mxu0 %vm46_vm1, %v2351_v49 }
 0xaa5   :  { %2244 = vmatpush3.bf16.msra.mxu0 %v2574_v39  ;;  %2102 = vmatprep.mubr.msk.f32.mxu0 %vm2418_vm0, %v2419_v1 }
 0xaa6   :  { %2245 = vmatprep.subr.bf16.mxu0 %v2417_v0 }
 0xaa9   :  { %2247 = vmatpush3.bf16.msra.mxu0 %v2585_v45 }
 0xaaa   :  { %2254 = vmatprep.subr.bf16.mxu0 %v2417_v0 }
 0xb77   :  { %v1091_v50 = vpop.f32.mrb[12].mxu0 }
 0xb78   :  { %v1096_v51 = vrot.slane %v1091_v50, 7  ;;  %v2082_v52 = vpop.f32.mrb[13].mxu0 }
 0xb7a   :  { %v1098_v53 = vadd.f32 %v1096_v51, %v2593_v47 }
 0xb7c   :  { %2352 = vtanh.f32 %v1098_v53 }
 0xb86   :  { %v2353_v54 = vpop.eup %2352 }
 0xb87   :  { %v1101_v55 = vrot.slane %v2353_v54, 1  ;;  %v1574_v61 = vsel %vm764_vm5, %v2351_v49, %v2353_v54 }
 0xb89   :  { %2092 = vmatmul.mubr.msk.f32.vlgmr.msra.gmra.mrb[12].mxu1 %vm46_vm1, %v1101_v55 }
 0xb8a   :  { %2250 = vmatpush3.bf16.msra.mxu1 %v2574_v39  ;;  %2113 = vmatprep.mubr.msk.f32.mxu1 %vm2418_vm0, %v2419_v1 }
 0xb8b   :  { %2251 = vmatprep.subr.bf16.mxu1 %v2417_v0 }
 0xb8e   :  { %2253 = vmatpush3.bf16.msra.mxu1 %v2585_v45 }
 0xb8f   :  { %2260 = vmatprep.subr.bf16.mxu1 %v2417_v0 }
 0xc5c   :  { %v1170_v56 = vpop.f32.mrb[12].mxu1 }
 0xc5d   :  { %v1175_v57 = vrot.slane %v1170_v56, 6  ;;  %v2093_v58 = vpop.f32.mrb[13].mxu1 }
 0xc5f   :  { %v1177_v59 = vadd.f32 %v1175_v57, %v2593_v47 }
 0xc61   :  { %2354 = vtanh.f32 %v1177_v59 }
 0xc6b   :  { %v2355_v60 = vpop.eup %2354 }
 0xc6c   :  { %v1180_v62 = vrot.slane %v2355_v60, 2  ;;  %v1575_v63 = vsel %vm766_vm6, %v1574_v61, %v2355_v60 }
 0xc6e   :  { %2103 = vmatmul.mubr.msk.f32.vlgmr.msra.gmra.mrb[14].mxu0 %vm46_vm1, %v1180_v62 }
 0xc6f   :  { %2256 = vmatpush3.bf16.msra.mxu0 %v2574_v39  ;;  %2124 = vmatprep.mubr.msk.f32.mxu0 %vm2418_vm0, %v2419_v1 }
 0xc70   :  { %2257 = vmatprep.subr.bf16.mxu0 %v2417_v0 }
 0xc73   :  { %2259 = vmatpush3.bf16.msra.mxu0 %v2585_v45 }
 0xc74   :  { %2266 = vmatprep.subr.bf16.mxu0 %v2417_v0 }
 0xd41   :  { %v1249_v2 = vpop.f32.mrb[14].mxu0 }
 0xd42   :  { %v1254_v3 = vrot.slane %v1249_v2, 5  ;;  %v2104_v4 = vpop.f32.mrb[15].mxu0 }
 0xd44   :  { %v1256_v5 = vadd.f32 %v1254_v3, %v2593_v47 }
 0xd46   :  { %2356 = vtanh.f32 %v1256_v5 }
 0xd50   :  { %v2357_v6 = vpop.eup %2356 }
 0xd51   :  { %v1259_v7 = vrot.slane %v2357_v6, 3  ;;  %v1576_v8 = vsel %vm768_vm7, %v1575_v63, %v2357_v6 }
 0xd53   :  { %2114 = vmatmul.mubr.msk.f32.vlgmr.msra.gmra.mrb[14].mxu1 %vm46_vm1, %v1259_v7 }
 0xd54   :  { %2262 = vmatpush3.bf16.msra.mxu1 %v2574_v39  ;;  %2135 = vmatprep.mubr.msk.f32.mxu1 %vm2418_vm0, %v2419_v1 }
 0xd55   :  { %2263 = vmatprep.subr.bf16.mxu1 %v2417_v0 }
 0xd58   :  { %2265 = vmatpush3.bf16.msra.mxu1 %v2585_v45 }
 0xd59   :  { %2149 = vmatprep.subr.mxu1 %v2419_v1 }
 0xe26   :  { %v1328_v9 = vpop.f32.mrb[14].mxu1 }
 0xe27   :  { %v1333_v10 = vrot.slane %v1328_v9, 4  ;;  %v2115_v13 = vpop.f32.mrb[15].mxu1 }
 0xe29   :  { %v1335_v14 = vadd.f32 %v1333_v10, %v2593_v47 }
 0xe2b   :  { %2358 = vtanh.f32 %v1335_v14 }
 0xe35   :  { %v2359_v17 = vpop.eup %2358 }
 0xe36   :  { %v1338_v18 = vrot.slane %v2359_v17, 4  ;;  %v1577_v19 = vsel %vm770_vm8, %v1576_v8, %v2359_v17 }
 0xe38   :  { %2125 = vmatmul.mubr.msk.f32.vlgmr.msra.gmra.mrb[16].mxu0 %vm46_vm1, %v1338_v18 }
 0xe39   :  { %2268 = vmatpush3.bf16.msra.mxu0 %v2574_v39  ;;  %2146 = vmatprep.mubr.msk.f32.mxu0 %vm2418_vm0, %v2419_v1  ;;  %v27_v39 = vld [vmem:[#allocation2 + $0x20] sm:$0xff] }
 0xe3a   :  { %2269 = vmatprep.subr.bf16.mxu0 %v2417_v0  ;;  %v2273_v42 = vpack.c.bf16 %v28_v40, %v27_v39 }
 0xe3d   :  { %2271 = vmatpush3.bf16.msra.mxu0 %v2585_v45  ;;  %v2324_v45 = vpack.i.bf16 %v28_v40, %v27_v39 }
 0xe3e   :  { %2278 = vmatprep.subr.bf16.mxu0 %v2417_v0 }
 0xe3f   :  { %2325 = vrot.lane.b32.xlu1 %v2324_v45, %s2420_s0 }
 0xe43   :  { %1652 = vrot.lane.b32.xlu1 %v2465_v15, %s2421_s20 }
 0xf0b   :  { %v1407_v20 = vpop.f32.mrb[16].mxu0 }
 0xf0c   :  { %v1412_v21 = vrot.slane %v1407_v20, 3  ;;  %v2126_v22 = vpop.f32.mrb[17].mxu0 }
 0xf0e   :  { %v1414_v23 = vadd.f32 %v1412_v21, %v2593_v47 }
 0xf10   :  { %2360 = vtanh.f32 %v1414_v23 }
 0xf1a   :  { %v2361_v24 = vpop.eup %2360 }
 0xf1b   :  { %v1417_v26 = vrot.slane %v2361_v24, 5  ;;  %v1578_v27 = vsel %vm772_vm9, %v1577_v19, %v2361_v24 }
 0xf1d   :  { %2136 = vmatmul.mubr.msk.f32.vlgmr.msra.gmra.mrb[16].mxu1 %vm46_vm1, %v1417_v26 }
 0xf1e   :  { %2151 = vmatprep.mubr.msk.f32.mxu1 %vm2418_vm0, %v2419_v1 }
 0xff0   :  { %v1486_v28 = vpop.f32.mrb[16].mxu1 }
 0xff1   :  { %v1491_v29 = vrot.slane %v1486_v28, 2  ;;  %v2137_v30 = vpop.f32.mrb[17].mxu1 }
 0xff3   :  { %v1493_v32 = vadd.f32 %v1491_v29, %v2593_v47 }
 0xff5   :  { %2362 = vtanh.f32 %v1493_v32 }
 0xfff   :  { %v2363_v33 = vpop.eup %2362 }
0x1000   :  { %v1496_v31 = vrot.slane %v2363_v33, 6  ;;  %v1579_v34 = vsel %vm774_vm10, %v1578_v27, %v2363_v33 }
0x1002   :  { %2147 = vmatmul.mubr.msk.f32.vlgmr.msra.gmra.mrb[18].mxu0 %vm46_vm1, %v1496_v31 }
0x1003   :  { %2173 = vmatprep.mubr.msk.f32.mxu0 %vm2418_vm0, %v2419_v1 }
0x10d5   :  { %v1565_v35 = vpop.f32.mrb[18].mxu0 }
0x10d6   :  { %v1570_v36 = vrot.slane %v1565_v35, 1  ;;  %v2148_v37 = vpop.f32.mrb[19].mxu0 }
0x10d8   :  { %v1572_v38 = vadd.f32 %v1570_v36, %v2593_v47  ;;  %v2331_v47 = vpop.permute.xlu0 %2330 }
0x10d9   :  { %v2332_v50 = vunpack.i.l.bf16 %v2331_v47 }
0x10da   :  { %2364 = vtanh.f32 %v1572_v38 }
0x10dc   :  { %v1746_v60 = vpop.permute.xlu0 %1745 }
0x10e4   :  { %v2365_v41 = vpop.eup %2364 }
0x10e5   :  { %v1580_v43 = vsel %vm776_vm11, %v1579_v34, %v2365_v41 }
0x10e6   :  { %2150 = vmatpush3.msra.mxu1 %v1580_v43 }
0x10e7   :  { %2152 = vmatmul.mubr.msk.f32.vlgmr.msra.gmra.mrb[18].mxu1 %vm120_vm3, %v2478_v25  ;;  %2272 = vmatprep.subr.bf16.mxu1 %v2417_v0  ;;  %v2326_v25 = vpop.permute.xlu1 %2325 }
0x10e8   :  { %2274 = vmatpush3.bf16.msra.mxu1 %v2273_v42  ;;  %2162 = vmatprep.mubr.msk.f32.mxu1 %vm2418_vm0, %v2419_v1  ;;  %v2328_v48 = vunpack.i.h.bf16 %v2326_v25  ;;  %v2327_v49 = vunpack.i.l.bf16 %v2326_v25  ;;  %v2333_v1 = vunpack.i.h.bf16 %v2331_v47 }
0x10e9   :  { %2275 = vmatprep.subr.bf16.mxu1 %v2417_v0 }
0x10ea   :  { %v2279_v51 = vpack.c.bf16 %v2328_v48, %v2327_v49  ;;  %v2282_v52 = vpack.c.bf16 %v2333_v1, %v2332_v50 }
0x10eb   :  { %v1653_v15 = vpop.permute.xlu1 %1652 }
0x10ec   :  { %2277 = vmatpush3.bf16.msra.mxu1 %v2276_v44  ;;  %2280 = vmatpush3.bf16.msra.mxu0 %v2279_v51 }
0x10ed   :  { %2281 = vmatprep.subr.bf16.mxu0 %v2417_v0 }
0x10f0   :  { %2283 = vmatpush3.bf16.msra.mxu0 %v2282_v52 }
0x11ba   :  { %v1647_v53 = vpop.f32.mrb[18].mxu1 }
0x11bb   :  { %v1651_v54 = vsel %vm35_vm4, %v1580_v43, %v1647_v53  ;;  %v2153_v55 = vpop.f32.mrb[19].mxu1 }
0x11bc   :  { %2163 = vmatmul.mubr.msk.f32.vlgmr.msra.gmra.mrb[20].mxu1 %vm46_vm1, %v1651_v54 }
0x128f   :  { %v1724_v56 = vpop.f32.mrb[20].mxu1 }
0x1290   :  { %v1725_v57 = vadd.f32 %v1724_v56, %v1653_v15  ;;  %v2164_v58 = vpop.f32.mrb[21].mxu1 }
0x1292   :  { %v1728_v59 = vmax.f32 %v1725_v57, 0.0 }
0x1294   :  { %2174 = vmatmul.mubr.msk.f32.vlgmr.msra.gmra.mrb[20].mxu0 %vm46_vm1, %v1728_v59 }
0x1367   :  { %v1817_v61 = vpop.f32.mrb[20].mxu0 }
0x1368   :  { %v1818_v0 = vadd.f32 %v1817_v61, %v1746_v60  ;;  %v2175_v62 = vpop.f32.mrb[21].mxu0 }
0x136a   :  { %1821 = vst.msk [vmem:[#allocation5] sm:$0xff] %vm46_vm1, %v1818_v0 }
0x136b   :  { %2399 = shalt.err (!%p2396_p12)
}
0x136c   :  { %s2400_s27 = scalar_lea.hbm %s2682_s1, 128 }
0x136d   :  { %p2401_p13 = scmp.ne.s32.totalorder %s2682_s1, %s2400_s27  ;;  %p2404_p0 = scmp.lt.u32.totalorder %s2400_s27, %s2682_s1 }
0x136f   :  { %p2406_p1 = pnand %p2404_p0, %p2401_p13 }
0x1371   :  { %2409 = shalt.err (!%p2406_p1)
}
0x1372   :  { %1831 = dma.vmem_to_hbm [thread:$0]  %s1829_s23, 128, %s2682_s1, [#allocation4]  }
0x1373   :  { %2412 = dma.done.wait [#allocation4], 128  }
0x1374   :  { %2413 = vsyncadd [#allocation4], 4294967168 }
0x1375   :  { %1835 = vsyncpa [#allocation3], 1 }
0x1376   :  { %1836 = vsyncpa [#allocation4], 1 }

</bundles_post_ra>
